<compile_context>
chip_gen: v5e
topology: v5e:2x2
jax: 0.10.0
libtpu: 0.0.40
codegen_flags: <defaults>
</compile_context>

<pallas_src>
import numpy as np
import jax
import jax.numpy as jnp
from jax.experimental import pallas as pl
from jax.experimental.pallas import tpu as pltpu


def _block_kernel(x_ref, w_ref, b_ref, o_ref):
    """Fused Conv2d(k=2) + ReLU + MaxPool2d(2) for one grid step (B images).

    x_ref : (1, 2*Mp, K)   Mp = padded B*Hp rows per h-parity; K = 2*W*Cin.
                           Row order [h_parity, image, pooled_row]; lanes hold
                           [input row r | input row r+1], each W*Cin wide.
    w_ref : (K, 2*D)       cols [0:D)  -> conv column 2*wp   (even, padded)
                           cols [D:2D) -> conv column 2*wp+1 (odd,  padded)
    b_ref : (1, D)         bias, repeated per pooled column, zero padded.
    o_ref : (1, Mp, D)     pooled output; lane co*Wp + wp valid for < Cout*Wp.
    """
    Mp = o_ref.shape[1]
    D = o_ref.shape[2]

    # Single MXU matmul per step: K=128 contraction, 256 output lanes.
    y = jnp.dot(x_ref[0], w_ref[...], preferred_element_type=jnp.float32)  # (2Mp, 2D)

    # MaxPool over H: the two conv-row parities sit in the top/bottom Mp rows
    # (sublane-tile aligned because Mp is a multiple of 8).
    yh = jnp.maximum(y[:Mp, :], y[Mp:, :])                                 # (Mp, 2D)

    # MaxPool over W: even/odd conv columns sit in the two D-wide lane halves
    # (D is a multiple of 128, so this is a whole-vreg selection).
    yw = jnp.maximum(yh[:, :D], yh[:, D:])                                 # (Mp, D)

    # Bias + ReLU commute with max (monotone, bias constant per pool window).
    o_ref[0] = jnp.maximum(yw + b_ref[...], 0.0)


def block_forward(x_nchw, w_oihw, bias, *, images_per_step=None):
    """x_nchw: (N, Cin, H, W) f32; w_oihw: (Cout, Cin, 2, 2); bias: (Cout,)."""
    N, Cin, H, W = x_nchw.shape
    Cout = w_oihw.shape[0]
    Hc, Wc = H - 1, W - 1              # Conv2d(kernel=2, stride=1, valid)
    Hp, Wp = Hc // 2, Wc // 2          # MaxPool2d(2), floor mode
    WC = W * Cin                       # one packed input row (lane width)
    K = 2 * WC                         # matmul contraction (two input rows)
    CW = Cout * Wp                     # valid output lanes
    D = ((CW + 127) // 128) * 128      # lane-padded output width (mult of 128)

    # --- images per grid step ------------------------------------------------
    if images_per_step is None:
        B = max(1, 128 // (2 * Hp))            # fill the matmul M axis
        if N >= 2:
            B = min(B, max(1, N // 2))         # keep >=2 parallel steps (v7x)
        else:
            B = 1
    else:
        B = max(1, images_per_step)
    num_steps = -(-N // B)
    N_pad = num_steps * B
    M = B * Hp                                  # real pooled rows per step
    Mp = ((M + 7) // 8) * 8                     # sublane-padded rows per parity

    # --- input packing (pure XLA layout plumbing, done once) ----------------
    # NCHW -> NHWC -> (N, H, W*Cin); pad batch to N_pad.
    xh = jnp.transpose(x_nchw.astype(jnp.float32), (0, 2, 3, 1)).reshape(N, H, WC)
    if N_pad != N:
        xh = jnp.pad(xh, ((0, N_pad - N), (0, 0), (0, 0)))
    # For parity p and pooled row hp, conv row r = p + 2*hp needs input rows
    # r (kh=0) and r+1 (kh=1): concatenate them on the lane axis.
    row_lo = np.arange(2, dtype=np.int32)[:, None] + 2 * np.arange(Hp, dtype=np.int32)[None, :]
    x_lo = xh[:, row_lo, :]                     # (N_pad, 2, Hp, WC)  rows r
    x_hi = xh[:, row_lo + 1, :]                 # (N_pad, 2, Hp, WC)  rows r+1
    x_pack = jnp.concatenate([x_lo, x_hi], axis=-1)          # (N_pad, 2, Hp, K)
    # Stack (parity, image, pooled_row) on the M axis, pad rows to Mp.
    x_pack = (x_pack.reshape(num_steps, B, 2, Hp, K)
                    .transpose(0, 2, 1, 3, 4)
                    .reshape(num_steps, 2, M, K))
    if Mp != M:
        x_pack = jnp.pad(x_pack, ((0, 0), (0, 0), (0, Mp - M), (0, 0)))
    x_pack = x_pack.reshape(num_steps, 2 * Mp, K)

    # --- block-structured weights --------------------------------------------
    # W_mat[kh*WC + (2*wp + kwp + kw)*Cin + ci, kwp*D + co*Wp + wp] = w[co,ci,kh,kw]
    wflat = (jnp.transpose(w_oihw.astype(jnp.float32), (2, 3, 1, 0))
             .reshape(2, 2 * Cin, Cout))                    # [kh, kw*Cin+ci, co]
    place = np.zeros((2, Wp, WC, 2 * Cin), np.float32)      # static placement
    eye = np.eye(2 * Cin, dtype=np.float32)
    for kwp in range(2):
        for wp in range(Wp):
            base = (2 * wp + kwp) * Cin
            place[kwp, wp, base:base + 2 * Cin, :] = eye
    blk = jnp.einsum("pwKj,hjc->hpKcw", jnp.asarray(place), wflat)  # (2,2,WC,Cout,Wp)
    blk = blk.reshape(2, 2, WC, CW)
    blk = jnp.pad(blk, ((0, 0), (0, 0), (0, 0), (0, D - CW)))
    w_mat = jnp.transpose(blk, (0, 2, 1, 3)).reshape(K, 2 * D)      # (128, 256)

    bias_row = jnp.pad(jnp.repeat(bias.astype(jnp.float32), Wp),
                       (0, D - CW)).reshape(1, D)

    # --- fused kernel ---------------------------------------------------------
    out = pl.pallas_call(
        _block_kernel,
        out_shape=jax.ShapeDtypeStruct((num_steps, Mp, D), jnp.float32),
        grid_spec=pltpu.PrefetchScalarGridSpec(
            num_scalar_prefetch=0,
            grid=(num_steps,),
            in_specs=[
                pl.BlockSpec((1, 2 * Mp, K), lambda n: (n, 0, 0)),
                pl.BlockSpec((K, 2 * D), lambda n: (0, 0)),
                pl.BlockSpec((1, D), lambda n: (0, 0)),
            ],
            out_specs=pl.BlockSpec((1, Mp, D), lambda n: (n, 0, 0)),
        ),
        # Grid steps are independent batches of images: lets v7x shard them
        # across its 2 TensorCores (no-op on single-TC v5e/v6e).
        compiler_params=pltpu.CompilerParams(dimension_semantics=("parallel",)),
    )(x_pack, w_mat, bias_row)

    # --- unpack: drop padding, [hp, co*Wp + wp] -> NCHW -----------------------
    out = out[:, :M, :CW].reshape(num_steps * B, Hp, Cout, Wp)[:N]
    return jnp.transpose(out, (0, 2, 1, 3))


def _reference_block(x_nchw, w_oihw, bias):
    """Pure-JAX reference replicating the PyTorch module exactly."""
    y = jax.lax.conv_general_dilated(
        x_nchw, w_oihw, window_strides=(1, 1), padding="VALID",
        dimension_numbers=("NCHW", "OIHW", "NCHW"))
    y = y + bias[None, :, None, None]
    y = jnp.maximum(y, 0.0)
    y = jax.lax.reduce_window(
        y, -jnp.inf, jax.lax.max,
        window_dimensions=(1, 1, 2, 2), window_strides=(1, 1, 2, 2),
        padding="VALID")
    return y


if __name__ == "__main__":
    # Small shapes consistent with the module: batch=2, in_ch=4, out_ch=8, 16x16.
    N, Cin, Cout, H, W = 2, 4, 8, 16, 16

    key = jax.random.PRNGKey(0)
    kx, kw, kb = jax.random.split(key, 3)
    x = jax.random.normal(kx, (N, Cin, H, W), dtype=jnp.float32)
    # Deterministic synthetic parameters (Conv2d(in_ch, out_ch, 2) shapes).
    fan_in = Cin * 2 * 2
    bound = 1.0 / (fan_in ** 0.5)
    weight = jax.random.uniform(kw, (Cout, Cin, 2, 2), jnp.float32, -bound, bound)
    bias = jax.random.uniform(kb, (Cout,), jnp.float32, -bound, bound)

    out = jax.block_until_ready(block_forward(x, weight, bias))
    ref = jax.block_until_ready(_reference_block(x, weight, bias))

    assert out.shape == (N, Cout, (H - 1) // 2, (W - 1) // 2), out.shape
    if not jnp.allclose(out, ref, atol=1e-4, rtol=1e-4):
        raise AssertionError("Pallas kernel does not match reference")
    print("KERNEL_OK")
</pallas_src>

<mosaic_0001>
module attributes {stable_mosaic.version = 11 : i64} {
  func.func @_block_kernel(%arg0: i32, %arg1: memref<1x16x128xf32, #tpu.memory_space<vmem>>, %arg2: memref<128x256xf32, #tpu.memory_space<vmem>>, %arg3: memref<1x128xf32, #tpu.memory_space<vmem>>, %arg4: memref<1x8x128xf32, #tpu.memory_space<vmem>>) attributes {dimension_semantics = [#tpu.dimension_semantics<parallel>], iteration_bounds = array<i64: 2>, scalar_prefetch = 0 : i64, scratch_operands = 0 : i64, tpu.core_type = #tpu.core_type<tc>, window_params = [{transform_indices = @transform_0, window_bounds = array<i64: 1, 16, 128>}, {pipeline_mode = #tpu.pipeline_mode<synchronous>, transform_indices = @transform_1, window_bounds = array<i64: 128, 256>}, {pipeline_mode = #tpu.pipeline_mode<synchronous>, transform_indices = @transform_2, window_bounds = array<i64: 1, 128>}, {transform_indices = @transform_3, window_bounds = array<i64: 1, 8, 128>}]} {
    %c0 = arith.constant 0 : index
    %c0_0 = arith.constant 0 : index
    %c0_1 = arith.constant 0 : index
    %0 = vector.load %arg1[%c0, %c0_0, %c0_1] : memref<1x16x128xf32, #tpu.memory_space<vmem>>, vector<1x16x128xf32>
    %1 = vector.shape_cast %0 : vector<1x16x128xf32> to vector<16x128xf32>
    %c0_2 = arith.constant 0 : index
    %c0_3 = arith.constant 0 : index
    %2 = vector.load %arg2[%c0_2, %c0_3] : memref<128x256xf32, #tpu.memory_space<vmem>>, vector<128x256xf32>
    %cst = arith.constant dense<0.000000e+00> : vector<16x256xf32>
    %3 = tpu.matmul %1, %2, %cst {dimension_numbers = #tpu.dot_dimension_numbers<[1], [0], [0], [1], [0, 0, 1, 1], [], []>} : vector<16x128xf32>, vector<128x256xf32>, vector<16x256xf32> -> vector<16x256xf32>
    %4 = vector.extract_strided_slice %3 {offsets = [0, 0], sizes = [8, 256], strides = [1, 1]} : vector<16x256xf32> to vector<8x256xf32>
    %5 = vector.extract_strided_slice %3 {offsets = [8, 0], sizes = [8, 256], strides = [1, 1]} : vector<16x256xf32> to vector<8x256xf32>
    %6 = arith.maximumf %4, %5 : vector<8x256xf32>
    %7 = vector.extract_strided_slice %6 {offsets = [0, 0], sizes = [8, 128], strides = [1, 1]} : vector<8x256xf32> to vector<8x128xf32>
    %8 = vector.extract_strided_slice %6 {offsets = [0, 128], sizes = [8, 128], strides = [1, 1]} : vector<8x256xf32> to vector<8x128xf32>
    %9 = arith.maximumf %7, %8 : vector<8x128xf32>
    %c0_4 = arith.constant 0 : index
    %c0_5 = arith.constant 0 : index
    %10 = vector.load %arg3[%c0_4, %c0_5] : memref<1x128xf32, #tpu.memory_space<vmem>>, vector<1x128xf32>
    %11 = vector.broadcast %10 : vector<1x128xf32> to vector<8x128xf32>
    %12 = arith.addf %9, %11 : vector<8x128xf32>
    %cst_6 = arith.constant 0.000000e+00 : f32
    %13 = vector.broadcast %cst_6 : f32 to vector<8x128xf32>
    %14 = arith.maximumf %12, %13 : vector<8x128xf32>
    %c0_7 = arith.constant 0 : index
    %c0_8 = arith.constant 0 : index
    %c0_9 = arith.constant 0 : index
    %15 = vector.load %arg4[%c0_7, %c0_8, %c0_9] : memref<1x8x128xf32, #tpu.memory_space<vmem>>, vector<1x8x128xf32>
    %16 = vector.shape_cast %15 : vector<1x8x128xf32> to vector<8x128xf32>
    %17 = vector.shape_cast %14 : vector<8x128xf32> to vector<1x8x128xf32>
    tpu.vector_store %arg4[%c0_7, %c0_8, %c0_9], %17 {strides = array<i32>} : memref<1x8x128xf32, #tpu.memory_space<vmem>>, vector<1x8x128xf32>,
    return
  }
  func.func @transform_0(%arg0: i32) -> (i32, i32, i32) {
    %c0_i32 = arith.constant 0 : i32
    %c0_i32_0 = arith.constant 0 : i32
    %c0_i32_1 = arith.constant 0 : i32
    return %arg0, %c0_i32, %c0_i32_0 : i32, i32, i32
  }
  func.func @transform_1(%arg0: i32) -> (i32, i32) {
    %c0_i32 = arith.constant 0 : i32
    %c0_i32_0 = arith.constant 0 : i32
    %c0_i32_1 = arith.constant 0 : i32
    return %c0_i32, %c0_i32_0 : i32, i32
  }
  func.func @transform_2(%arg0: i32) -> (i32, i32) {
    %c0_i32 = arith.constant 0 : i32
    %c0_i32_0 = arith.constant 0 : i32
    %c0_i32_1 = arith.constant 0 : i32
    return %c0_i32, %c0_i32_0 : i32, i32
  }
  func.func @transform_3(%arg0: i32) -> (i32, i32, i32) {
    %c0_i32 = arith.constant 0 : i32
    %c0_i32_0 = arith.constant 0 : i32
    %c0_i32_1 = arith.constant 0 : i32
    return %arg0, %c0_i32, %c0_i32_0 : i32, i32, i32
  }
}

</mosaic_0001>

<bundles_post_ra>
// kernel: tpu_custom_call.1
= control target key start
LH: loop header
LB: loop body
LE: loop exit
PB: predicated region body
PF: predicated region fallthrough
CT: control target
= control target key end

     0   :  { %8 = vsyncpa [#allocation3], 0  ;;  %s809_s0 = inlined_call_operand.hbm [shape: f32[2,16,128], index: 0, kind: input, shape index: {}]   ;;  %s810_s1 = inlined_call_operand.hbm [shape: f32[128,256], index: 1, kind: input, shape index: {}]   ;;  %s811_s2 = inlined_call_operand.vmem [shape: f32[1,128], index: 2, kind: input, shape index: {}]   ;;  %s812_s3 = inlined_call_operand.hbm [shape: f32[2,8,128], index: 3, kind: output, shape index: {}]  }
   0x1   :  { %10 = vsyncpa [#allocation3 + $0x1], 0 }
   0x2   :  { %11 = vsyncpa [#allocation6], 0 }
   0x3   :  { %12 = vsyncpa [#allocation4], 0 }
   0x4   :  { %14 = vsyncpa [#allocation4 + $0x1], 0  ;;  %s661_s12 = smov 0   ;;  %s663_s13 = smov 0  }
   0x5   :  { %s665_s14 = smov 0   ;;  %s667_s15 = smov 0  }
   0x6 LB: > { %s682_s16 = sadd.s32 4294967295, %s634_s15   ;;  %s394_s17 = sadd.s32 4294967294, %s634_s15   ;;  %s634_s15 = sphi %s667_s15, %s822_s15   ;;  %s630_s14 = sphi %s665_s14, %s821_s14   ;;  %s626_s13 = sphi %s663_s13, %s820_s13   ;;  %s622_s12 = sphi %s661_s12, %s819_s12  }
   0x7   : > { %p40_p0 = scmp.ne.s32.totalorder %s626_s13, %s622_s12  ;;  %p41_p1 = scmp.eq.s32.totalorder %s682_s16, 0 }
   0x8   : > { %p106_p2 = scmp.eq.s32.totalorder %s682_s16, 1  ;;  %p112_p3 = scmp.eq.s32.totalorder %s394_s17, 1 }
   0x9   : > { %p691_p4 = por %p41_p1, %p40_p0  ;;  %p395_p5 = scmp.ge.s32.totalorder %s634_s15, 1 }
   0xa   : > { %p696_p6 = por %p112_p3, %p40_p0  ;;  %p119_p7 = scmp.lt.s32.totalorder %s634_s15, 3 }
   0xb   : > { %s130_s22 = sshll.u32 %s810_s1, 4  ;;  %s636_s24 = smov [#allocation5]   ;;  %s131_s22 = int_to_ptr.hbm [resolvable:$true] %s130_s22 }
   0xc   : > { %p704_p8 = pnand %p395_p5, %p119_p7  ;;  %s132_s25 = sshll.u32 %s636_s24, 4  ;;  %s133_s25 = int_to_ptr.vmem [resolvable:$true] %s132_s25 }
   0xd   : > { %s714_s26 = sadd.s32 1, %s634_s15   ;;  %s637_s27 = smov 256  }
   0xe   : > { %p450_p9 = pneg %p704_p8  ;;  %s638_s28 = smov 16  }
   0xf   : > { %s24_s29 = ssub.s32 %s634_s15, %s714_s26  ;;  %s27_s30 = sadd.s32 1, %s630_s14 }
  0x10   : > { %p451_p10 = pnand %p450_p9, %p41_p1  ;;  %p25_p12 = scmp.eq.s32.totalorder %s24_s29, 0 }
  0x11   : > { %p34_p13 = scmp.ne.s32.totalorder %s630_s14, %s626_s13  ;;  %p35_p0 = scmp.eq.s32.totalorder %s634_s15, 0 }
  0x12   : > { %453 = dma.hbm_to_vmem [thread:$0]  (!%p451_p10), %s131_s22, 4096, %s133_s25, [#allocation6], %s637_s27, %s637_s27, %s638_s28  }
  0x13   : > { %p463_p3 = scmp.lt.s32.totalorder %s634_s15, 2  ;;  %p36_p5 = por %p35_p0, %p34_p13 }
  0x14   : > { %s724_s4 = scalar_select %p25_p12, %s630_s14, %s27_s30  }
  0x15   : > { %p728_p7 = por %p106_p2, %p34_p13  ;;  %s149_s6 = sand.u32 1, %s630_s14  }
  0x16   : > { %s409_s7 = sshll.u32 %s634_s15, 4  ;;  %s398_s8 = sshll.u32 %s149_s6, 4 }
  0x17   : > { %s158_s11 = scalar_lea.hbm %s809_s0, %s409_s7  ;;  %s153_s20 = scalar_lea.vmem [#allocation2], %s398_s8 }
  0x18   : > { %s159_s17 = sshll.u32 %s158_s11, 4  ;;  %s161_s21 = sshll.u32 %s153_s20, 4  ;;  %s160_s17 = int_to_ptr.hbm [resolvable:$true] %s159_s17  ;;  %s162_s21 = int_to_ptr.vmem [resolvable:$true] %s161_s21 }
  0x19   : > { %p739_p9 = pnand %p463_p3, %p36_p5  ;;  %s150_s24 = scalar_lea.sflag [#allocation3], %s149_s6 }
  0x1a   : > { %s534_s25 = sshra.s32 %s160_s17, 4  ;;  %s541_s30 = scalar_lea.hbm %s809_s0, 32  ;;  %s535_s25 = int_to_ptr.hbm [resolvable:$true] %s534_s25 }
  0x1b   : > { %s536_s27 = scalar_lea.hbm %s535_s25, 16  ;;  %p538_p10 = pneg %p739_p9 }
  0x1c   : > { %p537_p2 = scmp.ne.s32.totalorder %s535_s25, %s536_s27  ;;  %p542_p0 = scmp.lt.s32.totalorder %s535_s25, %s809_s0 }
  0x1d   : > { %p543_p3 = scmp.lt.s32.totalorder %s541_s30, %s536_s27 }
  0x1e   : > { %p539_p12 = pnand %p538_p10, %p537_p2 }
  0x1f   : > { %p544_p5 = por %p543_p3, %p542_p0 }
  0x20   : > { %p540_p13 = pneg %p539_p12 }
  0x22   : > { %p545_p11 = pnand %p544_p5, %p540_p13 }
  0x24   : > { %548 = shalt.err (!%p545_p11)
}
  0x25   : > { %s639_s6 = smov 128   ;;  %s640_s9 = smov 8  }
  0x26   : > { %457 = dma.hbm_to_vmem [thread:$0]  (!%p739_p9), %s160_s17, 256, %s162_s21, %s150_s24, %s639_s6, %s639_s6, %s640_s9  }
  0x27   : > { %173 = sbr.rel (%p704_p8) target bundleno = 222 (0xde), region = 32  ;;  %s756_s10 = sand.u32 (!%p704_p8), 1, %s626_s13  }
  0x28   : > { %s402_s11 = sshll.u32 (!%p704_p8), %s756_s10, 4  ;;  %s176_s20 = scalar_lea.sflag (!%p704_p8), [#allocation3], %s756_s10 }
  0x29   : > { %s760_s25 = scalar_lea.vmem (!%p704_p8), [#allocation2], %s402_s11 }
  0x2c   : > { %609 = dma.done.wait (%p691_p4), %s176_s20, 256  }
  0x2d   : > { %611 = vsyncadd (%p691_p4), %s176_s20, 4294967040 }
  0x2e   : > { %613 = dma.done.wait (%p41_p1), [#allocation6], 4096  }
  0x2f   : > { %615 = vsyncadd (%p41_p1), [#allocation6], 4294963200  ;;  %v240_v0 = vld [vmem:[#allocation5 + $0xf0] sm:$0xff]  ;;  %v241_v1 = vld [vmem:[#allocation5 + $0xf8] sm:$0xff]  ;;  %s404_s18 = sshll.u32 %s756_s10, 3  ;;  %s406_s23 = sshll.u32 %s682_s16, 3 }
  0x30   : > { %v238_v2 = vld [vmem:[#allocation5 + $0xe0] sm:$0xff]  ;;  %410 = vmatpush.msra.mxu2 %v240_v0  ;;  %426 = vmatpush.msra.mxu3 %v241_v1  ;;  %v239_v3 = vld [vmem:[#allocation5 + $0xe8] sm:$0xff]  ;;  %v236_v4 = vld [vmem:[#allocation5 + $0xd0] sm:$0xff]  ;;  %s309_s27 = scalar_lea.hbm %s812_s3, %s406_s23  ;;  %s207_s28 = scalar_lea.vmem [#allocation7], %s404_s18 }
  0x31   : > { %v237_v5 = vld [vmem:[#allocation5 + $0xd8] sm:$0xff]  ;;  %242 = vmatpush.msra.mxu0 %v240_v0  ;;  %265 = vmatpush.msra.mxu1 %v241_v1  ;;  %v234_v6 = vld [vmem:[#allocation5 + $0xc0] sm:$0xff]  ;;  %v235_v7 = vld [vmem:[#allocation5 + $0xc8] sm:$0xff]  ;;  %s311_s29 = sshll.u32 %s207_s28, 4  ;;  %s313_s30 = sshll.u32 %s309_s27, 4  ;;  %s312_s29 = int_to_ptr.vmem [resolvable:$true] %s311_s29  ;;  %s314_s30 = int_to_ptr.hbm [resolvable:$true] %s313_s30 }
  0x32   : > { %411 = vmatpush.msra.mxu2 %v238_v2  ;;  %427 = vmatpush.msra.mxu3 %v239_v3  ;;  %v232_v8 = vld [vmem:[#allocation5 + $0xb0] sm:$0xff]  ;;  %v233_v9 = vld [vmem:[#allocation5 + $0xb8] sm:$0xff]  ;;  %v230_v10 = vld [vmem:[#allocation5 + $0xa0] sm:$0xff]  ;;  %s299_s16 = scalar_lea.sflag [#allocation4], %s756_s10  ;;  %s578_s7 = sshra.s32 %s314_s30, 4  ;;  %s579_s7 = int_to_ptr.hbm [resolvable:$true] %s578_s7 }
  0x33   : > { %243 = vmatpush.msra.mxu0 %v238_v2  ;;  %266 = vmatpush.msra.mxu1 %v239_v3  ;;  %v231_v11 = vld [vmem:[#allocation5 + $0xa8] sm:$0xff]  ;;  %v228_v12 = vld [vmem:[#allocation5 + $0x90] sm:$0xff]  ;;  %v229_v13 = vld [vmem:[#allocation5 + $0x98] sm:$0xff]  ;;  %s580_s8 = scalar_lea.hbm %s579_s7, 8  ;;  %s584_s11 = scalar_lea.hbm %s812_s3, 16 }
  0x34   : > { %412 = vmatpush.msra.mxu2 %v236_v4  ;;  %428 = vmatpush.msra.mxu3 %v237_v5  ;;  %v226_v14 = vld [vmem:[#allocation5 + $0x80] sm:$0xff]  ;;  %v227_v15 = vld [vmem:[#allocation5 + $0x88] sm:$0xff]  ;;  %v224_v16 = vld [vmem:[#allocation5 + $0x70] sm:$0xff]  ;;  %p581_p1 = scmp.ne.s32.totalorder %s579_s7, %s580_s8  ;;  %p585_p11 = scmp.lt.s32.totalorder %s579_s7, %s812_s3 }
  0x35   : > { %244 = vmatpush.msra.mxu0 %v236_v4  ;;  %267 = vmatpush.msra.mxu1 %v237_v5  ;;  %v225_v17 = vld [vmem:[#allocation5 + $0x78] sm:$0xff]  ;;  %v222_v18 = vld [vmem:[#allocation5 + $0x60] sm:$0xff]  ;;  %v223_v19 = vld [vmem:[#allocation5 + $0x68] sm:$0xff]  ;;  %p586_p9 = scmp.lt.s32.totalorder %s584_s11, %s580_s8 }
  0x36   : > { %413 = vmatpush.msra.mxu2 %v234_v6  ;;  %429 = vmatpush.msra.mxu3 %v235_v7  ;;  %v220_v20 = vld [vmem:[#allocation5 + $0x50] sm:$0xff]  ;;  %v221_v21 = vld [vmem:[#allocation5 + $0x58] sm:$0xff]  ;;  %v218_v22 = vld [vmem:[#allocation5 + $0x40] sm:$0xff]  ;;  %p582_p4 = pnand %p581_p1, %p728_p7 }
  0x37   : > { %245 = vmatpush.msra.mxu0 %v234_v6  ;;  %268 = vmatpush.msra.mxu1 %v235_v7  ;;  %v219_v23 = vld [vmem:[#allocation5 + $0x48] sm:$0xff]  ;;  %v216_v24 = vld [vmem:[#allocation5 + $0x30] sm:$0xff]  ;;  %v217_v25 = vld [vmem:[#allocation5 + $0x38] sm:$0xff]  ;;  %p587_p2 = por %p586_p9, %p585_p11 }
  0x38   : > { %414 = vmatpush.msra.mxu2 %v232_v8  ;;  %430 = vmatpush.msra.mxu3 %v233_v9  ;;  %v214_v26 = vld [vmem:[#allocation5 + $0x20] sm:$0xff]  ;;  %v215_v27 = vld [vmem:[#allocation5 + $0x28] sm:$0xff]  ;;  %v212_v28 = vld [vmem:[#allocation5 + $0x10] sm:$0xff]  ;;  %p583_p8 = pneg %p582_p4 }
  0x39   : > { %246 = vmatpush.msra.mxu0 %v232_v8  ;;  %269 = vmatpush.msra.mxu1 %v233_v9  ;;  %v213_v29 = vld [vmem:[#allocation5 + $0x18] sm:$0xff]  ;;  %v210_v30 = vld [vmem:[#allocation5] sm:$0xff]  ;;  %v211_v31 = vld [vmem:[#allocation5 + $0x8] sm:$0xff] }
  0x3a   : > { %415 = vmatpush.msra.mxu2 %v230_v10  ;;  %431 = vmatpush.msra.mxu3 %v231_v11  ;;  %v209_v32 = vld [vmem:[%s760_s25 + $0x8] sm:$0xff]  ;;  %v208_v33 = vld [vmem:[%s760_s25] sm:$0xff]  ;;  %p588_p10 = pnand %p587_p2, %p583_p8 }
  0x3b   : > { %247 = vmatpush.msra.mxu0 %v230_v10  ;;  %270 = vmatpush.msra.mxu1 %v231_v11  ;;  %v503_v40 = vld [vmem:[%s811_s2] ss:$0 sm:$0xff] }
  0x3c   : > { %416 = vmatpush.msra.mxu2 %v228_v12  ;;  %432 = vmatpush.msra.mxu3 %v229_v13 }
  0x3d   : > { %248 = vmatpush.msra.mxu0 %v228_v12  ;;  %271 = vmatpush.msra.mxu1 %v229_v13 }
  0x3e   : > { %417 = vmatpush.msra.mxu2 %v226_v14  ;;  %433 = vmatpush.msra.mxu3 %v227_v15 }
  0x3f   : > { %249 = vmatpush.msra.mxu0 %v226_v14  ;;  %272 = vmatpush.msra.mxu1 %v227_v15 }
  0x40   : > { %418 = vmatpush.msra.mxu2 %v224_v16  ;;  %434 = vmatpush.msra.mxu3 %v225_v17 }
  0x41   : > { %250 = vmatpush.msra.mxu0 %v224_v16  ;;  %273 = vmatpush.msra.mxu1 %v225_v17 }
  0x42   : > { %419 = vmatpush.msra.mxu2 %v222_v18  ;;  %435 = vmatpush.msra.mxu3 %v223_v19 }
  0x43   : > { %251 = vmatpush.msra.mxu0 %v222_v18  ;;  %274 = vmatpush.msra.mxu1 %v223_v19 }
  0x44   : > { %420 = vmatpush.msra.mxu2 %v220_v20  ;;  %436 = vmatpush.msra.mxu3 %v221_v21 }
  0x45   : > { %252 = vmatpush.msra.mxu0 %v220_v20  ;;  %275 = vmatpush.msra.mxu1 %v221_v21 }
  0x46   : > { %421 = vmatpush.msra.mxu2 %v218_v22  ;;  %437 = vmatpush.msra.mxu3 %v219_v23 }
  0x47   : > { %253 = vmatpush.msra.mxu0 %v218_v22  ;;  %276 = vmatpush.msra.mxu1 %v219_v23 }
  0x48   : > { %422 = vmatpush.msra.mxu2 %v216_v24  ;;  %438 = vmatpush.msra.mxu3 %v217_v25 }
  0x49   : > { %254 = vmatpush.msra.mxu0 %v216_v24  ;;  %277 = vmatpush.msra.mxu1 %v217_v25 }
  0x4a   : > { %423 = vmatpush.msra.mxu2 %v214_v26  ;;  %439 = vmatpush.msra.mxu3 %v215_v27 }
  0x4b   : > { %255 = vmatpush.msra.mxu0 %v214_v26  ;;  %278 = vmatpush.msra.mxu1 %v215_v27 }
  0x4c   : > { %424 = vmatpush.msra.mxu2 %v212_v28  ;;  %440 = vmatpush.msra.mxu3 %v213_v29 }
  0x4d   : > { %256 = vmatpush.msra.mxu0 %v212_v28  ;;  %279 = vmatpush.msra.mxu1 %v213_v29 }
  0x4e   : > { %425 = vmatpush.msra.mxu2 %v210_v30  ;;  %441 = vmatpush.msra.mxu3 %v211_v31 }
  0x4f   : > { %261 = vmatmul.f32.vlgmr.msra.gmra.mxu2 %v209_v32  ;;  %284 = vmatmul.f32.vlgmr.msra.gmra.mxu3 %v209_v32 }
  0x50   : > { %257 = vmatpush.msra.mxu0 %v210_v30  ;;  %280 = vmatpush.msra.mxu1 %v211_v31 }
  0x51   : > { %258 = vmatmul.f32.vlgmr.msra.gmra.mxu0 %v208_v33  ;;  %281 = vmatmul.f32.vlgmr.msra.gmra.mxu1 %v208_v33 }
  0xce   : > { %v259_v34 = vpop.f32.mrf.mxu0  ;;  %v282_v35 = vpop.f32.mrf.mxu1 }
  0xd2   : > { %v262_v36 = vpop.f32.mrf.mxu2  ;;  %v285_v37 = vpop.f32.mrf.mxu3 }
  0xd3   : > { %v288_v38 = vmax.f32 %v259_v34, %v262_v36  ;;  %v289_v39 = vmax.f32 %v282_v35, %v285_v37 }
  0xd5   : > { %v290_v41 = vmax.f32 %v288_v38, %v289_v39 }
  0xd7   : > { %v295_v42 = vadd.f32 %v503_v40, %v290_v41 }
  0xd9   : > { %v296_v43 = vmax.f32 %v295_v42, 0.0 }
  0xdb   : > { %297 = vst [vmem:[%s207_s28] sm:$0xff] %v296_v43 }
  0xdc   : > { %591 = shalt.err (!%p588_p10)
}
  0xdd   : > { %448 = dma.vmem_to_hbm [thread:$0]  (%p728_p7), %s312_s29, 128, %s314_s30, %s299_s16  }
  0xde PF: > { %s325_s10 = sand.u32 1, %s622_s12   ;;  %p818_p12 = scmp.ge.s32.totalorder %s634_s15, 2 }
  0xdf   : > { %s326_s18 = scalar_lea.sflag [#allocation4], %s325_s10 }
  0xe0   : > { %p459_p13 = pnand %p818_p12, %p696_p6 }
  0xe2   : > { %p460_p0 = pneg %p459_p13 }
  0xe4   : > { %617 = dma.done.wait (%p460_p0), %s326_s18, 128  }
  0xe5   : > { %619 = vsyncadd (%p460_p0), %s326_s18, 4294967168  ;;  %p17_p3 = scmp.ge.s32.totalorder %s714_s26, 4   ;;  %s819_s12 = smov %s626_s13 }
  0xe6   : > { %s820_s13 = smov %s630_s14  ;;  %s821_s14 = smov %s724_s4 }
  0xe7   : > { %s822_s15 = smov %s714_s26  ;;  %19 = sbr.rel (!%p17_p3) target bundleno = 6 (0x6), region = 81 }
  0xec   :  { %332 = vsyncpa [#allocation3], 1 }
  0xed   :  { %334 = vsyncpa [#allocation3 + $0x1], 1 }
  0xee   :  { %335 = vsyncpa [#allocation6], 1 }
  0xef   :  { %336 = vsyncpa [#allocation4], 1 }
  0xf0   :  { %338 = vsyncpa [#allocation4 + $0x1], 1 }

</bundles_post_ra>
